<compile_context>
chip_gen: v6e
topology: v6e:2x2x1
jax: 0.10.0
libtpu: 0.0.40
codegen_flags: <defaults>
</compile_context>

<pallas_src>
import jax
import jax.numpy as jnp
from jax.experimental import pallas as pl
from jax.experimental.pallas import tpu as pltpu


def _pos_embed_kernel(w_ref, o_ref):
    # w_ref: (row_tile, lanes) rows of the (possibly repacked) W_pos slab.
    # o_ref: (row_tile, lanes) output rows for (batch b, row tile r);
    #        the batch dim is squeezed out by the BlockSpec (None entry).
    o_ref[...] = w_ref[...]


def pos_embed(tokens: jax.Array, w_pos: jax.Array) -> jax.Array:
    """tokens: int array [batch, seq_len] (values unused); w_pos: [n_ctx, d_model]."""
    batch, seq_len = tokens.shape
    n_ctx, d_model = w_pos.shape
    assert seq_len <= n_ctx, "seq_len must not exceed n_ctx"

    dtype = w_pos.dtype
    itemsize = jnp.dtype(dtype).itemsize
    # Sublane multiple for this dtype: f32 -> 8, bf16 -> 16, int8/fp8 -> 32.
    sublane = max(8, 32 // itemsize)

    # --- choose a lane-dense layout for the copy ---------------------------
    if d_model % 128 == 0:
        # Already lane-dense; copy directly out of the full table (no slice
        # materialization: blocks only index rows < ceil(seq_len/tile)*tile).
        src = w_pos
        rows, lanes = seq_len, d_model
        repacked = False
    elif (seq_len * d_model) % 128 == 0:
        # Repack the per-batch slab into (rows, 128). The reshape is of a
        # small (seq_len, d_model) slice; cost is negligible vs. the
        # batch*seq*d_model output writes.
        rows = (seq_len * d_model) // 128
        lanes = 128
        src = w_pos[:seq_len].reshape(rows, lanes)
        repacked = True
    else:
        # Lane-sparse fallback (masked partial stores). Still correct.
        # TODO(synk): pad d_model to a lane multiple inside the consumer if
        # this path ever matters for performance.
        src = w_pos
        rows, lanes = seq_len, d_model
        repacked = False

    # --- block sizing -------------------------------------------------------
    vmem_limit_bytes = 48 * 1024 * 1024          # safe on v7x (64 MiB physical)
    target_block_bytes = 8 * 1024 * 1024         # ~85%+ of HBM write roofline

    bytes_per_row = max(1, lanes * itemsize)
    # TODO(synk): add a lane-axis tiling path if d_model ever gets so wide that
    # four minimum-sized (sublane x lanes) buffers exceed the VMEM limit.
    assert 4 * sublane * bytes_per_row <= vmem_limit_bytes, "d_model too wide"

    max_rows = max(sublane, target_block_bytes // bytes_per_row)
    row_tile = (max_rows // sublane) * sublane
    rows_ceil = -(-rows // sublane) * sublane    # smallest legal tile covering all rows
    row_tile = max(sublane, min(row_tile, rows_ceil))
    grid_rows = pl.cdiv(rows, row_tile)          # ragged last block handled by Pallas

    # batch innermost => constant input block index across consecutive steps.
    grid = (grid_rows, batch)

    out = pl.pallas_call(
        _pos_embed_kernel,
        out_shape=jax.ShapeDtypeStruct((batch, rows, lanes), dtype),
        grid_spec=pltpu.PrefetchScalarGridSpec(
            num_scalar_prefetch=0,
            grid=grid,
            in_specs=[
                # Same row tile of the W_pos slab is reused for every batch element.
                pl.BlockSpec((row_tile, lanes), lambda r, b: (r, 0)),
            ],
            out_specs=pl.BlockSpec(
                (None, row_tile, lanes), lambda r, b: (b, r, 0)
            ),
        ),
        compiler_params=pltpu.CompilerParams(
            dimension_semantics=("parallel", "parallel"),
            vmem_limit_bytes=vmem_limit_bytes,
        ),
    )(src)

    if repacked:
        # Contiguous, layout-preserving reshape back to (batch, seq, d_model).
        out = out.reshape(batch, seq_len, d_model)
    return out


if __name__ == "__main__":
    # Small, self-consistent config (mirrors Config fields at reduced size).
    n_ctx = 64
    d_model = 32
    batch = 2
    seq_len = 8
    init_range = 0.02

    key = jax.random.PRNGKey(0)
    k_w, k_tok = jax.random.split(key)

    # Deterministic parameter init: normal(std=init_range), like nn.init.normal_.
    w_pos = init_range * jax.random.normal(k_w, (n_ctx, d_model), dtype=jnp.float32)

    # Token values are irrelevant to PosEmbed; only their shape matters.
    tokens = jax.random.randint(k_tok, (batch, seq_len), 0, 100, dtype=jnp.int32)

    out = pos_embed(tokens, w_pos)
    out = jax.block_until_ready(out)

    # Reference check: broadcast of W_pos[:seq_len] over batch.
    ref = jnp.broadcast_to(w_pos[:seq_len][None, :, :], (batch, seq_len, d_model))
    assert out.shape == (batch, seq_len, d_model)
    assert out.dtype == w_pos.dtype
    assert jnp.allclose(out, ref), "mismatch vs reference"

    print("KERNEL_OK")
</pallas_src>

<mosaic_0001>
module attributes {stable_mosaic.version = 11 : i64} {
  func.func @_pos_embed_kernel(%arg0: i32, %arg1: i32, %arg2: memref<8x128xf32, #tpu.memory_space<vmem>>, %arg3: memref<1x8x128xf32, #tpu.memory_space<vmem>>) attributes {dimension_semantics = [#tpu.dimension_semantics<parallel>, #tpu.dimension_semantics<parallel>], iteration_bounds = array<i64: 1, 2>, scalar_prefetch = 0 : i64, scratch_operands = 0 : i64, tpu.core_type = #tpu.core_type<tc>, window_params = [{transform_indices = @transform_0, window_bounds = array<i64: 8, 128>}, {transform_indices = @transform_1, window_bounds = array<i64: 1, 8, 128>}]} {
    %c0 = arith.constant 0 : index
    %c0_0 = arith.constant 0 : index
    %0 = vector.load %arg2[%c0, %c0_0] : memref<8x128xf32, #tpu.memory_space<vmem>>, vector<8x128xf32>
    %c0_1 = arith.constant 0 : index
    %c0_2 = arith.constant 0 : index
    %c0_3 = arith.constant 0 : index
    %1 = vector.load %arg3[%c0_1, %c0_2, %c0_3] : memref<1x8x128xf32, #tpu.memory_space<vmem>>, vector<1x8x128xf32>
    %2 = vector.shape_cast %1 : vector<1x8x128xf32> to vector<8x128xf32>
    %3 = vector.shape_cast %0 : vector<8x128xf32> to vector<1x8x128xf32>
    tpu.vector_store %arg3[%c0_1, %c0_2, %c0_3], %3 {strides = array<i32>} : memref<1x8x128xf32, #tpu.memory_space<vmem>>, vector<1x8x128xf32>,
    return
  }
  func.func @transform_0(%arg0: i32, %arg1: i32) -> (i32, i32) {
    %c0_i32 = arith.constant 0 : i32
    %c0_i32_0 = arith.constant 0 : i32
    return %arg0, %c0_i32 : i32, i32
  }
  func.func @transform_1(%arg0: i32, %arg1: i32) -> (i32, i32, i32) {
    %c0_i32 = arith.constant 0 : i32
    %c0_i32_0 = arith.constant 0 : i32
    return %arg1, %arg0, %c0_i32 : i32, i32, i32
  }
}

</mosaic_0001>

<bundles_post_ra>
// kernel: tpu_custom_call.1
= control target key start
LH: loop header
LB: loop body
LE: loop exit
PB: predicated region body
PF: predicated region fallthrough
CT: control target
= control target key end

     0   :  { %6 = vsyncpa [#allocation3], 0  ;;  %s534_s0 = inlined_call_operand.hbm [shape: f32[2,128], index: 0, kind: input, shape index: {}]   ;;  %s535_s1 = inlined_call_operand.hbm [shape: f32[2,2,128], index: 1, kind: output, shape index: {}]  }
   0x1   :  { %7 = vsyncpa [#allocation4], 0 }
   0x2   :  { %9 = vsyncpa [#allocation4 + $0x1], 0  ;;  %s424_s6 = smov 0   ;;  %s426_s7 = smov 0  }
   0x3   :  { %s428_s8 = smov 0   ;;  %s430_s9 = smov 0  }
   0x4   :  { %s432_s10 = smov 0   ;;  %s434_s11 = smov 0  }
   0x5 LB: > { %s455_s12 = sadd.s32 4294967295, %s406_s11   ;;  %s238_s13 = sadd.s32 4294967294, %s406_s11   ;;  %s406_s11 = sphi %s434_s11, %s15_s11   ;;  %s402_s10 = sphi %s432_s10, %s543_s10   ;;  %s398_s9 = sphi %s430_s9, %s542_s9   ;;  %s394_s8 = sphi %s428_s8, %s541_s8   ;;  %s390_s7 = sphi %s426_s7, %s540_s7   ;;  %s386_s6 = sphi %s424_s6, %s539_s6  }
   0x6   : > { %s24_s14 = sadd.s32 1, %s402_s10  ;;  %s62_s15 = sadd.s32 1, %s394_s8 }
   0x7   : > { %p25_p0 = scmp.ge.s32.totalorder %s24_s14, 2  ;;  %p72_p1 = scmp.ne.s32.totalorder %s394_s8, %s390_s7 }
   0x8   : > { %p73_p2 = scmp.eq.s32.totalorder %s455_s12, 1  ;;  %p78_p3 = scmp.ne.s32.totalorder %s390_s7, %s386_s6 }
   0x9   : > { %s545_s14 = smov (%p25_p0, %s24_s14), 0  ;;  %p79_p5 = scmp.eq.s32.totalorder %s238_s13, 1 }
   0xa   : > { %p467_p4 = por %p73_p2, %p72_p1  ;;  %s57_s17 = ssub.s32 %s402_s10, %s545_s14 }
   0xb   : > { %p239_p6 = scmp.ge.s32.totalorder %s406_s11, 1  ;;  %p60_p7 = scmp.eq.s32.totalorder %s57_s17, 0 }
   0xc   : > { %p474_p8 = por %p79_p5, %p78_p3  ;;  %p86_p9 = scmp.lt.s32.totalorder %s406_s11, 3 }
   0xd   : > { %s480_s19 = scalar_select %p60_p7, %s394_s8, %s62_s15  }
   0xe   : > { %p482_p10 = pnand %p239_p6, %p86_p9 }
   0xf   : > { %p240_p11 = scmp.ne.s32.totalorder (!%p482_p10), %s455_s12, 0 }
  0x10   : > { %90 = sbr.rel (%p482_p10) target bundleno = 39 (0x27), region = 12 }
  0x15   : > { %94 = sbr.rel (%p240_p11) target bundleno = 39 (0x27), region = 16 }
  0x1a   : > { %100 = vsyncadd [#allocation3], 96  ;;  %s408_s21 = smov [#allocation2]  }
  0x1b   : > { %s105_s22 = sshll.u32 %s408_s21, 4  ;;  %s106_s22 = int_to_ptr.vmem [resolvable:$true] %s105_s22 }
  0x1c   : > { %s318_s23 = scalar_lea.vmem %s106_s22, 32  ;;  %s322_s24 = scalar_lea.vmem %s106_s22, 128 }
  0x1d   : > { %p319_p12 = scmp.ne.s32.totalorder %s106_s22, %s318_s23  ;;  %p323_p13 = scmp.lt.s32.totalorder %s106_s22, %s106_s22 }
  0x1e   : > { %p324_p0 = scmp.lt.s32.totalorder %s322_s24, %s318_s23 }
  0x20   : > { %p325_p1 = por %p324_p0, %p323_p13 }
  0x22   : > { %p326_p2 = pnand %p325_p1, %p319_p12 }
  0x24   : > { %329 = shalt.err (!%p326_p2)
}
  0x25   : > { %s409_s25 = smov 32   ;;  %s410_s26 = smov 2  }
  0x26   : > { %111 = dma.hbm_to_vmem [thread:$0]  %s534_s0, 32, %s106_s22, [#allocation3], %s409_s25, %s409_s25, %s410_s26  }
  0x27 PF: > { %121 = sbr.rel (%p482_p10) target bundleno = 73 (0x49), region = 24  ;;  %p255_p3 = scmp.eq.s32.totalorder (!%p482_p10), %s455_s12, 0 }
  0x2c   : > { %377 = dma.done.wait (%p255_p3), [#allocation3], 128  }
  0x2d   : > { %379 = vsyncadd (%p255_p3), [#allocation3], 4294967168  ;;  %s133_s29 = sand.u32 1, %s390_s7   ;;  %v142_v0 = vld [vmem:[#allocation2] sm:$0xff]  ;;  %151 = sbr.rel (!%p467_p4) target bundleno = 73 (0x49), region = 32 }
  0x2e   : > { %s243_s30 = sshll.u32 %s133_s29, 3  ;;  %s496_s3 = scalar_lea.sflag [#allocation4], %s133_s29 }
  0x2f   : > { %s135_s2 = scalar_lea.vmem [#allocation5], %s243_s30 }
  0x30   : > { %143 = vst [vmem:[%s135_s2] sm:$0xff] %v142_v0 }
  0x32   : > { %157 = vsyncadd %s496_s3, 96  ;;  %s245_s4 = sshll.u32 %s398_s9, 5  ;;  %s163_s5 = sshll.u32 %s135_s2, 4  ;;  %s164_s5 = int_to_ptr.vmem [resolvable:$true] %s163_s5 }
  0x33   : > { %s161_s15 = scalar_lea.hbm %s535_s1, %s245_s4  ;;  %s330_s17 = scalar_lea.vmem %s164_s5, 32 }
  0x34   : > { %p331_p5 = scmp.ne.s32.totalorder %s164_s5, %s330_s17  ;;  %s411_s20 = smov [#allocation5]  }
  0x35   : > { %s332_s21 = sshll.u32 %s411_s20, 4  ;;  %s333_s21 = int_to_ptr.vmem [resolvable:$false] %s332_s21 }
  0x36   : > { %s334_s22 = scalar_lea.vmem %s333_s21, 256  ;;  %p335_p6 = scmp.lt.s32.totalorder %s164_s5, %s333_s21 }
  0x37   : > { %p336_p7 = scmp.lt.s32.totalorder %s334_s22, %s330_s17 }
  0x39   : > { %p337_p9 = por %p336_p7, %p335_p6 }
  0x3b   : > { %p338_p4 = pnand %p337_p9, %p331_p5 }
  0x3d   : > { %341 = shalt.err (!%p338_p4)
}
  0x3e   : > { %s342_s16 = scalar_lea.hbm %s161_s15, 32  ;;  %s344_s24 = scalar_lea.hbm %s535_s1, 64 }
  0x3f   : > { %p343_p10 = scmp.ne.s32.totalorder %s161_s15, %s342_s16  ;;  %p345_p11 = scmp.lt.s32.totalorder %s161_s15, %s535_s1 }
  0x40   : > { %p346_p12 = scmp.lt.s32.totalorder %s344_s24, %s342_s16 }
  0x42   : > { %p347_p13 = por %p346_p12, %p345_p11 }
  0x44   : > { %p348_p0 = pnand %p347_p13, %p343_p10 }
  0x46   : > { %351 = shalt.err (!%p348_p0)
}
  0x47   : > { %s412_s27 = smov 32   ;;  %s413_s28 = smov 2  }
  0x48   : > { %169 = dma.vmem_to_hbm [thread:$0]  %s164_s5, 32, %s161_s15, %s496_s3, %s412_s27, %s412_s27, %s413_s28  }
  0x49 PF: > { %p256_p1 = scmp.ge.s32.totalorder %s406_s11, 2  ;;  %s178_s29 = sand.u32 1, %s386_s6  }
  0x4a   : > { %s179_s30 = scalar_lea.sflag [#allocation4], %s178_s29 }
  0x4b   : > { %p252_p2 = pnand %p256_p1, %p474_p8 }
  0x4d   : > { %p253_p3 = pneg %p252_p2 }
  0x4f   : > { %381 = dma.done.wait (%p253_p3), %s179_s30, 128  }
  0x50   : > { %383 = vsyncadd (%p253_p3), %s179_s30, 4294967168  ;;  %s15_s11 = sadd.s32 1, %s406_s11   ;;  %s539_s6 = smov %s390_s7 }
  0x51   : > { %p12_p5 = scmp.ge.s32.totalorder %s15_s11, 4   ;;  %s540_s7 = smov %s394_s8 }
  0x52   : > { %s541_s8 = smov %s480_s19  ;;  %s542_s9 = smov %s402_s10 }
  0x53   : > { %s543_s10 = smov %s545_s14  ;;  %14 = sbr.rel (!%p12_p5) target bundleno = 5 (0x5), region = 62 }
  0x58   :  { %184 = vsyncpa [#allocation3], 1 }
  0x59   :  { %186 = vsyncpa [#allocation3 + $0x1], 1 }
  0x5a   :  { %187 = vsyncpa [#allocation4], 1 }
  0x5b   :  { %189 = vsyncpa [#allocation4 + $0x1], 1 }

</bundles_post_ra>
